<compile_context>
chip_gen: v7x
topology: tpu7x:2x2x1
jax: 0.10.0
libtpu: 0.0.40
codegen_flags: <defaults>
</compile_context>

<pallas_src>
from typing import List

import jax
import jax.numpy as jnp
from jax.experimental import pallas as pl
from jax.experimental.pallas import tpu as pltpu


def _round_up(n: int, m: int) -> int:
    return ((n + m - 1) // m) * m


def _make_mlp_kernel(n_layers: int):
    """Kernel body for a feature-major MLP with `n_layers` Linear layers.

    Ref layout: (xT, tT, W0x, W0t, b0, W1, b1, ..., W_{L-1}, b_{L-1}, out).
    xT is (dim, tm), tT is (1, tm); weights are (out, in); biases are (out, 1).
    cat([x, t]) is folded into the split first weight: W0x @ xT + W0t * tT.
    """

    def kernel(*refs):
        xT_ref, tT_ref = refs[0], refs[1]
        out_ref = refs[-1]
        p = refs[2:-1]

        # Layer 0:  h = W0x @ xT + W0t * tT + b0   (broadcast FMA replaces concat)
        h = (jnp.dot(p[0][...], xT_ref[...], preferred_element_type=jnp.float32)
             + p[1][...] * tT_ref[...]
             + p[2][...])

        for i in range(1, n_layers):
            h = h * jax.lax.logistic(h)            # SiLU (EUP slot)
            w = p[3 + 2 * (i - 1)][...]
            b = p[4 + 2 * (i - 1)][...]
            h = jnp.dot(w, h, preferred_element_type=jnp.float32) + b

        out_ref[...] = h.astype(out_ref.dtype)

    return kernel


def init_mlp_params(key, dims: List[int]):
    """Deterministic init mimicking torch.nn.Linear default (U(-1/sqrt(fan_in), +)).

    Stored as (fan_in, fan_out) weights / (1, fan_out) biases (reference layout).
    """
    params = []
    for idx in range(len(dims) - 1):
        fan_in, fan_out = dims[idx], dims[idx + 1]
        key, kw, kb = jax.random.split(key, 3)
        bound = 1.0 / jnp.sqrt(jnp.float32(fan_in))
        w = jax.random.uniform(kw, (fan_in, fan_out), jnp.float32, -bound, bound)
        b = jax.random.uniform(kb, (1, fan_out), jnp.float32, -bound, bound)
        params.append((w, b))
    return params


def prepare_params(params, dim: int):
    """One-time (hoisted) preprocessing to the kernel's feature-major layout.

    Returns [W0x (h0,dim), W0t (h0,1), b0 (h0,1), W1 (h1,h0), b1 (h1,1), ...].
    """
    w0, b0 = params[0]
    assert w0.shape[0] == dim + 1, "first layer fan_in must be dim+1 (cat([x, t]))"
    flat = [w0[:dim].T, w0[dim:dim + 1].T, b0.reshape(-1, 1)]
    for w, b in params[1:]:
        flat.extend([w.T, b.reshape(-1, 1)])
    return [jnp.asarray(a, jnp.float32) for a in flat]


def mlp_vector_field_fm(xT, tT, flat, *, max_tile: int = 4096):
    """Feature-major forward:  xT (dim, bs), tT (1, bs)  ->  (out_dim, bs)."""
    dim, bs = xT.shape
    n_layers = (len(flat) - 1) // 2
    out_dim = flat[-1].shape[0]

    # Tiling over the batch (lane) axis.  Single full-array block when it fits ->
    # no pad / no slice.  Otherwise 128-multiple tiles with an even step count so
    # v7x's two TensorCores get a balanced "parallel" split.
    n_steps = pl.cdiv(bs, max_tile)
    if n_steps > 1:
        n_steps = _round_up(n_steps, 2)
        tm = _round_up(pl.cdiv(bs, n_steps), 128)
        bs_pad = tm * n_steps
        xT = jnp.pad(xT, ((0, 0), (0, bs_pad - bs)))
        tT = jnp.pad(tT, ((0, 0), (0, bs_pad - bs)))
    else:
        tm, bs_pad = bs, bs
    grid = (bs_pad // tm,)

    x_spec = pl.BlockSpec((dim, tm), lambda i: (0, i))
    t_spec = pl.BlockSpec((1, tm), lambda i: (0, i))
    # Weights/biases: full-array blocks with constant index_map -> VMEM-resident.
    w_specs = [pl.BlockSpec(a.shape, lambda i: (0, 0)) for a in flat]
    out_spec = pl.BlockSpec((out_dim, tm), lambda i: (0, i))

    # Advisory cost estimate for XLA's scheduler.
    layer_out = [flat[0].shape[0]] + [flat[3 + 2 * (i - 1)].shape[0]
                                      for i in range(1, n_layers)]
    dims_chain = [dim + 1] + layer_out
    flops = 2 * bs_pad * sum(a * b for a, b in zip(dims_chain[:-1], dims_chain[1:]))
    transcendentals = bs_pad * sum(layer_out[:-1]) if n_layers > 1 else 0
    bytes_accessed = (xT.size * xT.dtype.itemsize + tT.size * tT.dtype.itemsize
                      + sum(a.size * a.dtype.itemsize for a in flat)
                      + bs_pad * out_dim * xT.dtype.itemsize)

    out = pl.pallas_call(
        _make_mlp_kernel(n_layers),
        out_shape=jax.ShapeDtypeStruct((out_dim, bs_pad), xT.dtype),
        grid=grid,
        in_specs=[x_spec, t_spec] + w_specs,
        out_specs=out_spec,
        compiler_params=pltpu.CompilerParams(dimension_semantics=("parallel",)),
        cost_estimate=pl.CostEstimate(flops=int(flops),
                                      transcendentals=int(transcendentals),
                                      bytes_accessed=int(bytes_accessed)),
    )(xT, tT, *flat)

    return out if bs_pad == bs else out[:, :bs]


def mlp_vector_field(x, t, flat, *, max_tile: int = 4096):
    """Row-major convenience wrapper:  x (bs, dim), t (bs, 1)  ->  (bs, dim)."""
    return mlp_vector_field_fm(x.T, t.T, flat, max_tile=max_tile).T


def mlp_vector_field_ref(x, t, params):
    """Pure-JAX reference for correctness check (reference (in,out) param layout)."""
    h = jnp.concatenate([x, t], axis=-1)
    n = len(params)
    for i, (w, b) in enumerate(params):
        h = jnp.dot(h, w, precision=jax.lax.Precision.HIGHEST) + b
        if i < n - 1:
            h = h * jax.nn.sigmoid(h)
    return h


if __name__ == "__main__":
    key = jax.random.PRNGKey(0)

    # Shapes consistent with the module: dim=4, hiddens=[32, 64].
    dim = 4
    hiddens = [32, 64]

    k_params, k_x, k_t = jax.random.split(key, 3)
    params = init_mlp_params(k_params, [dim + 1] + hiddens + [dim])
    flat = prepare_params(params, dim)   # hoisted: done once, reused across calls

    # Exercise: tiny batch, non-multiple-of-8 batch, medium batch (single tile),
    # and a forced multi-tile / even-grid / padded path (max_tile=128).
    for bs, max_tile in ((8, 4096), (13, 4096), (600, 4096), (600, 128)):
        k_x, kx = jax.random.split(k_x)
        k_t, kt = jax.random.split(k_t)
        x = jax.random.normal(kx, (bs, dim), jnp.float32)
        t = jax.random.uniform(kt, (bs, 1), jnp.float32)

        out = jax.block_until_ready(mlp_vector_field(x, t, flat, max_tile=max_tile))
        ref = mlp_vector_field_ref(x, t, params)

        assert out.shape == (bs, dim)
        assert jnp.allclose(out, ref, atol=1e-4, rtol=1e-4), \
            f"mismatch vs reference (bs={bs}, max_tile={max_tile})"

    print("KERNEL_OK")
</pallas_src>

<mosaic_0001>
module attributes {stable_mosaic.version = 11 : i64} {
  func.func @kernel(%arg0: i32, %arg1: memref<4x8xf32, #tpu.memory_space<vmem>>, %arg2: memref<1x8xf32, #tpu.memory_space<vmem>>, %arg3: memref<32x4xf32, #tpu.memory_space<vmem>>, %arg4: memref<32x1xf32, #tpu.memory_space<vmem>>, %arg5: memref<32x1xf32, #tpu.memory_space<vmem>>, %arg6: memref<64x32xf32, #tpu.memory_space<vmem>>, %arg7: memref<64x1xf32, #tpu.memory_space<vmem>>, %arg8: memref<4x64xf32, #tpu.memory_space<vmem>>, %arg9: memref<4x1xf32, #tpu.memory_space<vmem>>, %arg10: memref<4x8xf32, #tpu.memory_space<vmem>>) attributes {dimension_semantics = [#tpu.dimension_semantics<parallel>], iteration_bounds = array<i64: 1>, scalar_prefetch = 0 : i64, scratch_operands = 0 : i64, tpu.core_type = #tpu.core_type<tc>, window_params = [{transform_indices = @transform_0, window_bounds = array<i64: 4, 8>}, {transform_indices = @transform_1, window_bounds = array<i64: 1, 8>}, {pipeline_mode = #tpu.pipeline_mode<synchronous>, transform_indices = @transform_2, window_bounds = array<i64: 32, 4>}, {pipeline_mode = #tpu.pipeline_mode<synchronous>, transform_indices = @transform_3, window_bounds = array<i64: 32, 1>}, {pipeline_mode = #tpu.pipeline_mode<synchronous>, transform_indices = @transform_4, window_bounds = array<i64: 32, 1>}, {pipeline_mode = #tpu.pipeline_mode<synchronous>, transform_indices = @transform_5, window_bounds = array<i64: 64, 32>}, {pipeline_mode = #tpu.pipeline_mode<synchronous>, transform_indices = @transform_6, window_bounds = array<i64: 64, 1>}, {pipeline_mode = #tpu.pipeline_mode<synchronous>, transform_indices = @transform_7, window_bounds = array<i64: 4, 64>}, {pipeline_mode = #tpu.pipeline_mode<synchronous>, transform_indices = @transform_8, window_bounds = array<i64: 4, 1>}, {transform_indices = @transform_9, window_bounds = array<i64: 4, 8>}]} {
    %c0 = arith.constant 0 : index
    %c0_0 = arith.constant 0 : index
    %0 = vector.load %arg3[%c0, %c0_0] : memref<32x4xf32, #tpu.memory_space<vmem>>, vector<32x4xf32>
    %c0_1 = arith.constant 0 : index
    %c0_2 = arith.constant 0 : index
    %1 = vector.load %arg1[%c0_1, %c0_2] : memref<4x8xf32, #tpu.memory_space<vmem>>, vector<4x8xf32>
    %cst = arith.constant dense<0.000000e+00> : vector<32x8xf32>
    %2 = tpu.matmul %0, %1, %cst {dimension_numbers = #tpu.dot_dimension_numbers<[1], [0], [0], [1], [0, 0, 1, 1], [], []>} : vector<32x4xf32>, vector<4x8xf32>, vector<32x8xf32> -> vector<32x8xf32>
    %c0_3 = arith.constant 0 : index
    %c0_4 = arith.constant 0 : index
    %3 = vector.load %arg4[%c0_3, %c0_4] : memref<32x1xf32, #tpu.memory_space<vmem>>, vector<32x1xf32>
    %c0_5 = arith.constant 0 : index
    %c0_6 = arith.constant 0 : index
    %4 = vector.load %arg2[%c0_5, %c0_6] : memref<1x8xf32, #tpu.memory_space<vmem>>, vector<1x8xf32>
    %5 = vector.broadcast %3 : vector<32x1xf32> to vector<32x8xf32>
    %6 = vector.broadcast %4 : vector<1x8xf32> to vector<32x8xf32>
    %7 = arith.mulf %5, %6 : vector<32x8xf32>
    %8 = arith.addf %2, %7 : vector<32x8xf32>
    %c0_7 = arith.constant 0 : index
    %c0_8 = arith.constant 0 : index
    %9 = vector.load %arg5[%c0_7, %c0_8] : memref<32x1xf32, #tpu.memory_space<vmem>>, vector<32x1xf32>
    %10 = vector.broadcast %9 : vector<32x1xf32> to vector<32x8xf32>
    %11 = arith.addf %8, %10 : vector<32x8xf32>
    %12 = arith.negf %11 : vector<32x8xf32>
    %13 = math.exp %12 : vector<32x8xf32>
    %cst_9 = arith.constant 1.000000e+00 : f32
    %14 = vector.broadcast %cst_9 : f32 to vector<32x8xf32>
    %15 = arith.addf %14, %13 : vector<32x8xf32>
    %16 = arith.divf %14, %15 : vector<32x8xf32>
    %17 = arith.mulf %11, %16 : vector<32x8xf32>
    %c0_10 = arith.constant 0 : index
    %c0_11 = arith.constant 0 : index
    %18 = vector.load %arg6[%c0_10, %c0_11] : memref<64x32xf32, #tpu.memory_space<vmem>>, vector<64x32xf32>
    %c0_12 = arith.constant 0 : index
    %c0_13 = arith.constant 0 : index
    %19 = vector.load %arg7[%c0_12, %c0_13] : memref<64x1xf32, #tpu.memory_space<vmem>>, vector<64x1xf32>
    %cst_14 = arith.constant dense<0.000000e+00> : vector<64x8xf32>
    %20 = tpu.matmul %18, %17, %cst_14 {dimension_numbers = #tpu.dot_dimension_numbers<[1], [0], [0], [1], [0, 0, 1, 1], [], []>} : vector<64x32xf32>, vector<32x8xf32>, vector<64x8xf32> -> vector<64x8xf32>
    %21 = vector.broadcast %19 : vector<64x1xf32> to vector<64x8xf32>
    %22 = arith.addf %20, %21 : vector<64x8xf32>
    %23 = arith.negf %22 : vector<64x8xf32>
    %24 = math.exp %23 : vector<64x8xf32>
    %cst_15 = arith.constant 1.000000e+00 : f32
    %25 = vector.broadcast %cst_15 : f32 to vector<64x8xf32>
    %26 = arith.addf %25, %24 : vector<64x8xf32>
    %27 = arith.divf %25, %26 : vector<64x8xf32>
    %28 = arith.mulf %22, %27 : vector<64x8xf32>
    %c0_16 = arith.constant 0 : index
    %c0_17 = arith.constant 0 : index
    %29 = vector.load %arg8[%c0_16, %c0_17] : memref<4x64xf32, #tpu.memory_space<vmem>>, vector<4x64xf32>
    %c0_18 = arith.constant 0 : index
    %c0_19 = arith.constant 0 : index
    %30 = vector.load %arg9[%c0_18, %c0_19] : memref<4x1xf32, #tpu.memory_space<vmem>>, vector<4x1xf32>
    %cst_20 = arith.constant dense<0.000000e+00> : vector<4x8xf32>
    %31 = tpu.matmul %29, %28, %cst_20 {dimension_numbers = #tpu.dot_dimension_numbers<[1], [0], [0], [1], [0, 0, 1, 1], [], []>} : vector<4x64xf32>, vector<64x8xf32>, vector<4x8xf32> -> vector<4x8xf32>
    %32 = vector.broadcast %30 : vector<4x1xf32> to vector<4x8xf32>
    %33 = arith.addf %31, %32 : vector<4x8xf32>
    %c0_21 = arith.constant 0 : index
    %c0_22 = arith.constant 0 : index
    %34 = vector.load %arg10[%c0_21, %c0_22] : memref<4x8xf32, #tpu.memory_space<vmem>>, vector<4x8xf32>
    tpu.vector_store %arg10[%c0_21, %c0_22], %33 {strides = array<i32>} : memref<4x8xf32, #tpu.memory_space<vmem>>, vector<4x8xf32>,
    return
  }
  func.func @transform_0(%arg0: i32) -> (i32, i32) {
    %c0_i32 = arith.constant 0 : i32
    %c0_i32_0 = arith.constant 0 : i32
    return %c0_i32, %arg0 : i32, i32
  }
  func.func @transform_1(%arg0: i32) -> (i32, i32) {
    %c0_i32 = arith.constant 0 : i32
    %c0_i32_0 = arith.constant 0 : i32
    return %c0_i32, %arg0 : i32, i32
  }
  func.func @transform_2(%arg0: i32) -> (i32, i32) {
    %c0_i32 = arith.constant 0 : i32
    %c0_i32_0 = arith.constant 0 : i32
    %c0_i32_1 = arith.constant 0 : i32
    return %c0_i32, %c0_i32_0 : i32, i32
  }
  func.func @transform_3(%arg0: i32) -> (i32, i32) {
    %c0_i32 = arith.constant 0 : i32
    %c0_i32_0 = arith.constant 0 : i32
    %c0_i32_1 = arith.constant 0 : i32
    return %c0_i32, %c0_i32_0 : i32, i32
  }
  func.func @transform_4(%arg0: i32) -> (i32, i32) {
    %c0_i32 = arith.constant 0 : i32
    %c0_i32_0 = arith.constant 0 : i32
    %c0_i32_1 = arith.constant 0 : i32
    return %c0_i32, %c0_i32_0 : i32, i32
  }
  func.func @transform_5(%arg0: i32) -> (i32, i32) {
    %c0_i32 = arith.constant 0 : i32
    %c0_i32_0 = arith.constant 0 : i32
    %c0_i32_1 = arith.constant 0 : i32
    return %c0_i32, %c0_i32_0 : i32, i32
  }
  func.func @transform_6(%arg0: i32) -> (i32, i32) {
    %c0_i32 = arith.constant 0 : i32
    %c0_i32_0 = arith.constant 0 : i32
    %c0_i32_1 = arith.constant 0 : i32
    return %c0_i32, %c0_i32_0 : i32, i32
  }
  func.func @transform_7(%arg0: i32) -> (i32, i32) {
    %c0_i32 = arith.constant 0 : i32
    %c0_i32_0 = arith.constant 0 : i32
    %c0_i32_1 = arith.constant 0 : i32
    return %c0_i32, %c0_i32_0 : i32, i32
  }
  func.func @transform_8(%arg0: i32) -> (i32, i32) {
    %c0_i32 = arith.constant 0 : i32
    %c0_i32_0 = arith.constant 0 : i32
    %c0_i32_1 = arith.constant 0 : i32
    return %c0_i32, %c0_i32_0 : i32, i32
  }
  func.func @transform_9(%arg0: i32) -> (i32, i32) {
    %c0_i32 = arith.constant 0 : i32
    %c0_i32_0 = arith.constant 0 : i32
    return %c0_i32, %arg0 : i32, i32
  }
}

</mosaic_0001>

<bundles_post_ra>
// kernel: tpu_custom_call.1
= control target key start
LH: loop header
LB: loop body
LE: loop exit
PB: predicated region body
PF: predicated region fallthrough
CT: control target
= control target key end

     0   :  { %vm86_vm0 = vcmask 1043456   ;;  %vm73_vm1 = vcmask 31744   ;;  %v769_v5 = vmov 0   ;;  %s948_s0 = inlined_call_operand.vmem [shape: f32[4,8], index: 0, kind: input, shape index: {}]   ;;  %s949_s1 = inlined_call_operand.vmem [shape: f32[1,8], index: 1, kind: input, shape index: {}]   ;;  %s950_s2 = inlined_call_operand.vmem [shape: f32[32,4], index: 2, kind: input, shape index: {}]   ;;  %s951_s3 = inlined_call_operand.vmem [shape: f32[32,1], index: 3, kind: input, shape index: {}]   ;;  %s952_s4 = inlined_call_operand.vmem [shape: f32[32,1], index: 4, kind: input, shape index: {}]   ;;  %s953_s5 = inlined_call_operand.vmem [shape: f32[64,32], index: 5, kind: input, shape index: {}]   ;;  %s954_s6 = inlined_call_operand.vmem [shape: f32[64,1], index: 6, kind: input, shape index: {}]   ;;  %s955_s7 = inlined_call_operand.vmem [shape: f32[4,64], index: 7, kind: input, shape index: {}]   ;;  %s956_s8 = inlined_call_operand.vmem [shape: f32[4,1], index: 8, kind: input, shape index: {}]   ;;  %s957_s9 = inlined_call_operand.hbm [shape: f32[4,8], index: 9, kind: output, shape index: {}]  }
   0x1   :  { %v37_v0 = vld [vmem:[%s948_s0] sm:$0xf]  ;;  %v34_v2 = vld [vmem:[%s950_s2 + $0x8] sm:$0xff]  ;;  %v35_v3 = vld [vmem:[%s950_s2 + $0x10] sm:$0xff]  ;;  %695 = vset.pattern.permute.xlu0 %v769_v5  ;;  %696 = vset.pattern.permute.xlu1 %v769_v5 }
   0x2   :  { %v33_v1 = vld [vmem:[%s950_s2] sm:$0xff]  ;;  %623 = vmatprep.subr.msk.mxu0 %vm86_vm0, %v37_v0  ;;  %v40_v6 = vld [vmem:[%s951_s3 + $0x10] sm:$0xff]  ;;  %v36_v7 = vld [vmem:[%s950_s2 + $0x18] sm:$0xff] }
   0x3   :  { %625 = vmatprep.mubr.msk.f32.mxu0 %vm73_vm1, %v33_v1  ;;  %v38_v4 = vld [vmem:[%s951_s3] sm:$0xff]  ;;  %624 = vmatpush3.msk.msra.mxu0 %vm86_vm0, %v37_v0  ;;  %v39_v8 = vld [vmem:[%s951_s3 + $0x8] sm:$0xff]  ;;  %v41_v9 = vld [vmem:[%s951_s3 + $0x18] sm:$0xff] }
   0x4   :  { %626 = vmatmul.mubr.msk.f32.vlgmr.msra.gmra.mrb[0].mxu0 %vm73_vm1, %v34_v2  ;;  %45 = vperm.xlu0 %695, %v38_v4  }
   0x5   :  { %628 = vmatprep.mubr.msk.f32.mxu0 %vm73_vm1, %v35_v3  ;;  %55 = vperm.xlu1 %696, %v40_v6  }
   0x8   :  { %629 = vmatmul.mubr.msk.f32.gmra.mrb[2].mxu0 %vm73_vm1, %v36_v7  ;;  %50 = vperm.xlu0 %695, %v39_v8  }
   0x9   :  { %14 = vsyncpa [#allocation3], 0  ;;  %v175_v10 = vld [vmem:[%s952_s4] sm:$0xff]  ;;  %60 = vperm.xlu1 %696, %v41_v9   ;;  %v176_v11 = vld [vmem:[%s952_s4 + $0x8] sm:$0xff]  ;;  %vm287_vm2 = vcmask 261120   ;;  %vm771_vm3 = vmmov 0  }
   0xa   :  { %v177_v12 = vld [vmem:[%s952_s4 + $0x10] sm:$0xff]  ;;  %v178_v13 = vld [vmem:[%s952_s4 + $0x18] sm:$0xff]  ;;  %v239_v14 = vld [vmem:[%s954_s6] sm:$0xff]  ;;  %vm480_vm4 = vcmask 523264   ;;  %s773_s0 = smov [#allocation2]   ;;  %vm554_vm5 = vcmask 60416  }
   0xb   :  { %v240_v15 = vld [vmem:[%s954_s6 + $0x8] sm:$0xff]  ;;  %v241_v16 = vld [vmem:[%s954_s6 + $0x10] sm:$0xff]  ;;  %v242_v17 = vld [vmem:[%s954_s6 + $0x18] sm:$0xff]  ;;  %s562_s19 = sshll.u32 %s773_s0, 4  ;;  %s563_s19 = int_to_ptr.vmem [resolvable:$true] %s562_s19 }
   0xc   :  { %181 = vperm.xlu0 %695, %v175_v10   ;;  %v243_v18 = vld [vmem:[%s954_s6 + $0x20] sm:$0xff]  ;;  %v244_v19 = vld [vmem:[%s954_s6 + $0x28] sm:$0xff]  ;;  %v245_v20 = vld [vmem:[%s954_s6 + $0x30] sm:$0xff]  ;;  %s745_s20 = scalar_lea.vmem %s563_s19, 64  ;;  %p750_p1 = scmp.lt.s32.totalorder %s563_s19, %s563_s19 }
   0xd   :  { %186 = vperm.xlu1 %696, %v176_v11   ;;  %v246_v21 = vld [vmem:[%s954_s6 + $0x38] sm:$0xff]  ;;  %v474_v22 = vld [vmem:[%s956_s8] sm:$0xf]  ;;  %v232_v7 = vld [vmem:[%s953_s5 + $0x8] sm:$0xff]  ;;  %p746_p0 = scmp.ne.s32.totalorder %s563_s19, %s745_s20  ;;  %p751_p2 = scmp.lt.s32.totalorder %s745_s20, %s745_s20 }
   0xe   :  { %v231_v23 = vld [vmem:[%s953_s5] sm:$0xff]  ;;  %v233_v8 = vld [vmem:[%s953_s5 + $0x10] sm:$0xff]  ;;  %v234_v9 = vld [vmem:[%s953_s5 + $0x18] sm:$0xff] }
   0xf   :  { %639 = vmatprep.mubr.msk.f32.mxu1 %vm287_vm2, %v231_v23  ;;  %v570_v28 = vld [vmem:[%s949_s1] ss:$0 sm:$0xff]  ;;  %v236_v11 = vld [vmem:[%s953_s5 + $0x28] sm:$0xff]  ;;  %p752_p3 = por %p751_p2, %p750_p1 }
  0x10   :  { %191 = vperm.xlu0 %695, %v177_v12   ;;  %v235_v10 = vld [vmem:[%s953_s5 + $0x20] sm:$0xff]  ;;  %v237_v12 = vld [vmem:[%s953_s5 + $0x30] sm:$0xff] }
  0x11   :  { %196 = vperm.xlu1 %696, %v178_v13   ;;  %v238_v13 = vld [vmem:[%s953_s5 + $0x38] sm:$0xff]  ;;  %p753_p4 = pnand %p752_p3, %p746_p0 }
  0x14   :  { %249 = vperm.xlu0 %695, %v239_v14   ;;  %v770_v14 = vmov 0.0|0.0  }
  0x15   :  { %254 = vperm.xlu1 %696, %v240_v15   ;;  %678 = vmatprep.subr.bf16.mxu0 %v770_v14  ;;  %v772_v15 = vmov 0.0  }
  0x16   :  { %667 = vmatprep.mubr.msk.f32.mxu0 %vm771_vm3, %v772_v15 }
  0x18   :  { %259 = vperm.xlu0 %695, %v241_v16  }
  0x19   :  { %264 = vperm.xlu1 %696, %v242_v17  }
  0x1c   :  { %269 = vperm.xlu0 %695, %v243_v18  }
  0x1d   :  { %274 = vperm.xlu1 %696, %v244_v19  }
  0x20   :  { %279 = vperm.xlu0 %695, %v245_v20  }
  0x21   :  { %284 = vperm.xlu1 %696, %v246_v21  }
  0x24   :  { %477 = vperm.xlu0 %695, %v474_v22  }
  0x83   :  { %v46_v25 = vpop.permute.xlu0 %45 }
  0x84   :  { %v56_v24 = vpop.permute.xlu1 %55  ;;  %v69_v30 = vmul.f32 %v570_v28, %v46_v25 }
  0x85   :  { %v71_v39 = vmul.f32 %v570_v28, %v56_v24 }
  0x87   :  { %v51_v27 = vpop.permute.xlu0 %50 }
  0x88   :  { %v61_v26 = vpop.permute.xlu1 %60  ;;  %v70_v29 = vmul.f32 %v570_v28, %v51_v27 }
  0x89   :  { %v72_v37 = vmul.f32 %v570_v28, %v61_v26 }
  0x8b   :  { %v182_v33 = vpop.permute.xlu0 %181 }
  0x8c   :  { %v187_v31 = vpop.permute.xlu1 %186 }
  0x8f   :  { %v192_v48 = vpop.permute.xlu0 %191 }
  0x90   :  { %v197_v45 = vpop.permute.xlu1 %196 }
  0x93   :  { %v250_v17 = vpop.permute.xlu0 %249 }
  0x94   :  { %v255_v16 = vpop.permute.xlu1 %254 }
  0x97   :  { %v260_v20 = vpop.permute.xlu0 %259 }
  0x98   :  { %v265_v18 = vpop.permute.xlu1 %264 }
  0xd7   :  { %v627_v32 = vpop.f32.mrb[0].mxu0 }
  0xd8   :  { %v162_v34 = vadd.f32 %v627_v32, %v70_v29  ;;  %v156_v35 = vpop.f32.mrb[1].mxu0  ;;  %v275_v29 = vpop.permute.xlu1 %274 }
  0xd9   :  { %v157_v36 = vadd.f32 %v156_v35, %v69_v30 }
  0xda   :  { %v200_v38 = vadd.f32 %v187_v31, %v162_v34  ;;  %v270_v31 = vpop.permute.xlu0 %269 }
  0xdb   :  { %v199_v40 = vadd.f32 %v182_v33, %v157_v36  ;;  %v630_v41 = vpop.f32.mrb[2].mxu0 }
  0xdc   :  { %v577_v42 = vmul.f32 -1.442695, %v200_v38  ;;  %v172_v43 = vadd.f32 %v630_v41, %v72_v37  ;;  %v166_v44 = vpop.f32.mrb[3].mxu0 }
  0xdd   :  { %v576_v46 = vmul.f32 -1.442695, %v199_v40  ;;  %v167_v47 = vadd.f32 %v166_v44, %v71_v39  ;;  %v285_v39 = vpop.permute.xlu1 %284 }
  0xde   :  { %697 = vpow2.f32 %v577_v42  ;;  %v202_v49 = vadd.f32 %v197_v45, %v172_v43  ;;  %v280_v42 = vpop.permute.xlu0 %279 }
  0xdf   :  { %699 = vpow2.f32 %v576_v46  ;;  %v201_v50 = vadd.f32 %v192_v48, %v167_v47 }
  0xe0   :  { %v579_v51 = vmul.f32 -1.442695, %v202_v49 }
  0xe1   :  { %v578_v52 = vmul.f32 -1.442695, %v201_v50 }
  0xe2   :  { %701 = vpow2.f32 %v579_v51 }
  0xe3   :  { %703 = vpow2.f32 %v578_v52 }
  0xe8   :  { %v698_v53 = vpop.eup %697 }
  0xe9   :  { %v700_v54 = vpop.eup %699  ;;  %v216_v55 = vadd.f32 1.0, %v698_v53 }
  0xea   :  { %v215_v56 = vadd.f32 1.0, %v700_v54 }
  0xeb   :  { %705 = vrcp.f32 %v216_v55 }
  0xec   :  { %v702_v57 = vpop.eup %701  ;;  %707 = vrcp.f32 %v215_v56 }
  0xed   :  { %v704_v58 = vpop.eup %703  ;;  %v218_v59 = vadd.f32 1.0, %v702_v57 }
  0xee   :  { %v217_v60 = vadd.f32 1.0, %v704_v58 }
  0xef   :  { %709 = vrcp.f32 %v218_v59 }
  0xf0   :  { %711 = vrcp.f32 %v217_v60 }
  0xf5   :  { %v706_v61 = vpop.eup %705 }
  0xf6   :  { %v708_v62 = vpop.eup %707  ;;  %v228_v63 = vmul.f32 %v706_v61, %v200_v38 }
  0xf7   :  { %v227_v0 = vmul.f32 %v708_v62, %v199_v40 }
  0xf9   :  { %v710_v1 = vpop.eup %709  ;;  %v670_v2 = vpack.c.bf16 %v228_v63, %v227_v0 }
  0xfa   :  { %v712_v3 = vpop.eup %711  ;;  %v230_v4 = vmul.f32 %v710_v1, %v202_v49 }
  0xfb   :  { %v229_v5 = vmul.f32 %v712_v3, %v201_v50  ;;  %671 = vmatprep.subr.bf16.mxu1 %v670_v2 }
  0xfc   :  { %673 = vmatpush3.bf16.msra.mxu1 %v670_v2 }
  0xfd   :  { %v674_v6 = vpack.c.bf16 %v230_v4, %v229_v5 }
  0xff   :  { %675 = vmatprep.subr.bf16.mxu1 %v674_v6 }
 0x100   :  { %677 = vmatpush3.bf16.msra.mxu1 %v674_v6 }
 0x103   :  { %640 = vmatmul.mubr.msk.f32.vlgmr.msra.gmra.mrb[0].mxu1 %vm287_vm2, %v232_v7 }
 0x104   :  { %642 = vmatprep.mubr.msk.f32.mxu1 %vm287_vm2, %v233_v8 }
 0x107   :  { %643 = vmatmul.mubr.msk.f32.gmra.mrb[2].mxu1 %vm287_vm2, %v234_v9 }
 0x108   :  { %645 = vmatprep.mubr.msk.f32.mxu1 %vm287_vm2, %v235_v10 }
 0x10b   :  { %646 = vmatmul.mubr.msk.f32.gmra.mrb[4].mxu1 %vm287_vm2, %v236_v11 }
 0x10c   :  { %648 = vmatprep.mubr.msk.f32.mxu1 %vm287_vm2, %v237_v12 }
 0x10f   :  { %649 = vmatmul.mubr.msk.f32.gmra.mrb[6].mxu1 %vm287_vm2, %v238_v13 }
 0x1d6   :  { %v641_v19 = vpop.f32.mrb[0].mxu1 }
 0x1d7   :  { %v384_v21 = vadd.f32 %v641_v19, %v255_v16  ;;  %v378_v22 = vpop.f32.mrb[1].mxu1 }
 0x1d8   :  { %v379_v23 = vadd.f32 %v378_v22, %v250_v17  ;;  %v478_v22 = vpop.permute.xlu0 %477 }
 0x1d9   :  { %v589_v24 = vmul.f32 -1.442695, %v384_v21 }
 0x1da   :  { %v588_v25 = vmul.f32 -1.442695, %v379_v23  ;;  %v644_v26 = vpop.f32.mrb[2].mxu1 }
 0x1db   :  { %713 = vpow2.f32 %v589_v24  ;;  %v394_v27 = vadd.f32 %v644_v26, %v265_v18  ;;  %v388_v28 = vpop.f32.mrb[3].mxu1 }
 0x1dc   :  { %715 = vpow2.f32 %v588_v25  ;;  %v389_v30 = vadd.f32 %v388_v28, %v260_v20 }
 0x1dd   :  { %v591_v32 = vmul.f32 -1.442695, %v394_v27 }
 0x1de   :  { %v590_v33 = vmul.f32 -1.442695, %v389_v30  ;;  %v647_v34 = vpop.f32.mrb[4].mxu1 }
 0x1df   :  { %717 = vpow2.f32 %v591_v32  ;;  %v404_v35 = vadd.f32 %v647_v34, %v275_v29  ;;  %v398_v36 = vpop.f32.mrb[5].mxu1 }
 0x1e0   :  { %719 = vpow2.f32 %v590_v33  ;;  %v399_v37 = vadd.f32 %v398_v36, %v270_v31 }
 0x1e1   :  { %v593_v38 = vmul.f32 -1.442695, %v404_v35 }
 0x1e2   :  { %v592_v40 = vmul.f32 -1.442695, %v399_v37  ;;  %v650_v41 = vpop.f32.mrb[6].mxu1 }
 0x1e3   :  { %721 = vpow2.f32 %v593_v38  ;;  %v414_v43 = vadd.f32 %v650_v41, %v285_v39  ;;  %v408_v44 = vpop.f32.mrb[7].mxu1 }
 0x1e4   :  { %723 = vpow2.f32 %v592_v40  ;;  %v409_v45 = vadd.f32 %v408_v44, %v280_v42 }
 0x1e5   :  { %v714_v46 = vpop.eup %713  ;;  %v595_v47 = vmul.f32 -1.442695, %v414_v43 }
 0x1e6   :  { %v716_v48 = vpop.eup %715  ;;  %v442_v49 = vadd.f32 1.0, %v714_v46  ;;  %v594_v50 = vmul.f32 -1.442695, %v409_v45 }
 0x1e7   :  { %v441_v51 = vadd.f32 1.0, %v716_v48  ;;  %725 = vpow2.f32 %v595_v47 }
 0x1e8   :  { %727 = vrcp.f32 %v442_v49 }
 0x1e9   :  { %v718_v52 = vpop.eup %717  ;;  %729 = vrcp.f32 %v441_v51 }
 0x1ea   :  { %v720_v53 = vpop.eup %719  ;;  %v444_v54 = vadd.f32 1.0, %v718_v52  ;;  %731 = vpow2.f32 %v594_v50 }
 0x1eb   :  { %v443_v55 = vadd.f32 1.0, %v720_v53 }
 0x1ec   :  { %733 = vrcp.f32 %v444_v54 }
 0x1ed   :  { %v722_v56 = vpop.eup %721  ;;  %735 = vrcp.f32 %v443_v55 }
 0x1ee   :  { %v724_v57 = vpop.eup %723  ;;  %v446_v58 = vadd.f32 1.0, %v722_v56 }
 0x1ef   :  { %v445_v59 = vadd.f32 1.0, %v724_v57 }
 0x1f0   :  { %737 = vrcp.f32 %v446_v58 }
 0x1f1   :  { %v726_v60 = vpop.eup %725  ;;  %739 = vrcp.f32 %v445_v59 }
 0x1f2   :  { %v728_v61 = vpop.eup %727  ;;  %v448_v62 = vadd.f32 1.0, %v726_v60 }
 0x1f3   :  { %v730_v63 = vpop.eup %729  ;;  %v466_v0 = vmul.f32 %v728_v61, %v384_v21  ;;  %v473_v21 = vld [vmem:[%s955_s7] sm:$0xf] }
 0x1f4   :  { %v732_v1 = vpop.eup %731  ;;  %v465_v2 = vmul.f32 %v730_v63, %v379_v23  ;;  %741 = vrcp.f32 %v448_v62 }
 0x1f5   :  { %v447_v3 = vadd.f32 1.0, %v732_v1 }
 0x1f6   :  { %v734_v4 = vpop.eup %733  ;;  %v679_v5 = vpack.c.bf16 %v466_v0, %v465_v2 }
 0x1f7   :  { %v736_v6 = vpop.eup %735  ;;  %v468_v7 = vmul.f32 %v734_v4, %v394_v27  ;;  %743 = vrcp.f32 %v447_v3 }
 0x1f8   :  { %v467_v8 = vmul.f32 %v736_v6, %v389_v30  ;;  %680 = vmatpush3.bf16.msra.mxu0 %v679_v5 }
 0x1f9   :  { %681 = vmatprep.subr.bf16.mxu0 %v770_v14 }
 0x1fa   :  { %v738_v9 = vpop.eup %737  ;;  %v682_v10 = vpack.c.bf16 %v468_v7, %v467_v8 }
 0x1fb   :  { %v740_v11 = vpop.eup %739  ;;  %v470_v12 = vmul.f32 %v738_v9, %v404_v35 }
 0x1fc   :  { %v469_v13 = vmul.f32 %v740_v11, %v399_v37  ;;  %683 = vmatpush3.bf16.msra.mxu0 %v682_v10 }
 0x1fd   :  { %684 = vmatprep.subr.bf16.mxu0 %v770_v14 }
 0x1fe   :  { %v742_v15 = vpop.eup %741  ;;  %v685_v16 = vpack.c.bf16 %v470_v12, %v469_v13 }
 0x1ff   :  { %v472_v17 = vmul.f32 %v742_v15, %v414_v43 }
 0x200   :  { %686 = vmatpush3.bf16.msra.mxu0 %v685_v16 }
 0x201   :  { %v744_v18 = vpop.eup %743  ;;  %687 = vmatprep.subr.bf16.mxu0 %v770_v14 }
 0x202   :  { %v471_v19 = vmul.f32 %v744_v18, %v409_v45 }
 0x204   :  { %v688_v20 = vpack.c.bf16 %v472_v17, %v471_v19 }
 0x206   :  { %689 = vmatpush3.bf16.msra.mxu0 %v688_v20 }
 0x209   :  { %668 = vmatmul.mubr.msk.f32.vlgmr.msra.gmra.mrb[4].mxu0 %vm480_vm4, %v473_v21 }
 0x2dc   :  { %v550_v23 = vpop.f32.mrb[4].mxu0 }
 0x2dd   :  { %v551_v24 = vadd.f32 %v550_v23, %v478_v22  ;;  %v669_v25 = vpop.f32.mrb[5].mxu0 }
 0x2df   :  { %555 = vst.msk [vmem:[#allocation2] sm:$0xf] %vm554_vm5, %v551_v24 }
 0x2e0   :  { %756 = shalt.err (!%p753_p4)
}
 0x2e1   :  { %s757_s22 = scalar_lea.hbm %s957_s9, 64 }
 0x2e2   :  { %p758_p5 = scmp.ne.s32.totalorder %s957_s9, %s757_s22  ;;  %p761_p6 = scmp.lt.u32.totalorder %s757_s22, %s957_s9 }
 0x2e4   :  { %p763_p7 = pnand %p761_p6, %p758_p5 }
 0x2e6   :  { %766 = shalt.err (!%p763_p7)
}
 0x2e7   :  { %565 = dma.vmem_to_hbm [thread:$0]  %s563_s19, 64, %s957_s9, [#allocation3]  }
 0x2e8   :  { %767 = dma.done.wait [#allocation3], 64  }
 0x2e9   :  { %768 = vsyncadd [#allocation3], 4294967232 }
 0x2ea   :  { %569 = vsyncpa [#allocation3], 1 }

</bundles_post_ra>
